<compile_context>
chip_gen: v6e
topology: v6e:2x2x1
jax: 0.10.0
libtpu: 0.0.40
codegen_flags: <defaults>
</compile_context>

<pallas_src>
from typing import NamedTuple, Optional

import jax
import jax.numpy as jnp
import numpy as np
from jax.experimental import pallas as pl
from jax.experimental.pallas import tpu as pltpu


def _round_up(x: int, m: int) -> int:
    return (x + m - 1) // m * m


def _vmem_ceiling_bytes() -> int:
    """Generation-aware VMEM ceiling (~0.75x physical), v7x-safe fallback."""
    try:
        cap = int(pltpu.get_tpu_info().vmem_capacity_bytes)
    except Exception:
        cap = 64 * 1024 * 1024  # conservative (v7x has 64 MiB / TC)
    return int(cap * 0.75)


# --------------------------------------------------------------------------- #
# Kernel: one (i, j, k) grid step of  out = x @ w + bias, w already (K, N)
# --------------------------------------------------------------------------- #
def _palettized_linear_kernel(x_ref, w_ref, b_ref, o_ref, acc_ref):
    """x_ref: (TM,TK) activations; w_ref: (TK,TN) 1 B/elem weights;
    b_ref: (1,TN) f32 bias; o_ref: (TM,TN) output; acc_ref: (TM,TN) f32 scratch."""
    k = pl.program_id(2)

    @pl.when(k == 0)
    def _init():
        acc_ref[...] = jnp.zeros_like(acc_ref)

    w = w_ref[...]
    if w.dtype != x_ref.dtype:
        # fp8_e4m3 (or bf16) -> f32 -> activation dtype.  Exact for fp8 palette
        # values; a pure elementwise VPU convert that hides under MXU slack.
        # TODO(synk): on v7x feed the fp8 tile straight to the MXU (bf16 x fp8)
        # and drop this convert entirely.
        w = w.astype(jnp.float32).astype(x_ref.dtype)

    # Canonical ((1,),(0,)) contraction on the MXU with f32 accumulation;
    # no in-kernel transpose since weights are stored K-major.
    acc_ref[...] += jnp.dot(x_ref[...], w, preferred_element_type=jnp.float32)

    @pl.when(k == pl.num_programs(2) - 1)
    def _finalize():
        o_ref[...] = (acc_ref[...] + b_ref[...]).astype(o_ref.dtype)


# --------------------------------------------------------------------------- #
# One-time (weight-load time) preparation
# --------------------------------------------------------------------------- #
class PalettizedLinearParams(NamedTuple):
    w_kn: jax.Array        # (k_pad, n_pad) fp8_e4m3fn (or bf16 fallback), K-major
    bias: jax.Array        # (1, n_pad) float32 (zeros if no bias)
    out_features: int
    in_features: int
    tn: int
    tk: int


def prepare_palettized_weights(lookup_table, weight_idx,
                               bias: Optional[jax.Array] = None,
                               *, tn: int = 1024, tk: int = 1024
                               ) -> PalettizedLinearParams:
    """LUT expansion, transpose to K-major, tile-grid padding and 1 B/elem
    storage -- done exactly once so the per-forward weight HBM stream stays at
    1 byte/element instead of re-gathering/re-padding 2-4 B/elem every call."""
    out_features, in_features = weight_idx.shape
    lut_f32 = jnp.asarray(lookup_table, jnp.float32)

    # 1 B/elem storage when the palette is exactly fp8_e4m3-representable
    # (it is, by construction of FP8PalettizedLinear); else bf16 (2 B/elem).
    lut_roundtrip = lut_f32.astype(jnp.float8_e4m3fn).astype(jnp.float32)
    fp8_exact = bool(jax.device_get(jnp.all(lut_roundtrip == lut_f32)))
    store_dtype = jnp.float8_e4m3fn if fp8_exact else jnp.bfloat16

    # N/K tile sizes are fixed here so the weight padding happens exactly once.
    n_pad_min = _round_up(out_features, 128)
    k_pad_min = _round_up(in_features, 128)
    tn = min(tn, n_pad_min)
    tk = min(tk, k_pad_min)
    # v7x megacore: keep >=2 blocks along the parallel j axis when N allows it.
    if n_pad_min // tn < 2 and n_pad_min >= 256:
        tn = _round_up(n_pad_min // 2, 128)
    n_pad = _round_up(out_features, tn)
    k_pad = _round_up(in_features, tk)

    # lookup_table[weight] once, transposed to (in_features, out_features).
    w_full = jnp.take(lut_f32, weight_idx.astype(jnp.int32), axis=0)   # (O, I)
    w_kn = jnp.pad(w_full.T,
                   ((0, k_pad - in_features), (0, n_pad - out_features)))
    w_kn = w_kn.astype(store_dtype)

    if bias is None:
        b = jnp.zeros((1, n_pad), jnp.float32)
    else:
        b = jnp.pad(jnp.asarray(bias, jnp.float32).reshape(1, out_features),
                    ((0, 0), (0, n_pad - out_features)))

    return PalettizedLinearParams(w_kn, b, out_features, in_features, tn, tk)


# --------------------------------------------------------------------------- #
# Forward
# --------------------------------------------------------------------------- #
def fp8_palettized_linear(x, params: PalettizedLinearParams, *,
                          tm: int = 512, activation_dtype=jnp.bfloat16):
    """Forward of FP8PalettizedLinear: x @ lookup_table[weight].T + bias.

    `activation_dtype` defaults to bf16 (fast MXU path, ~1e-3 rel. error);
    pass jnp.float32 to keep full activation precision at reduced MXU rate.
    """
    orig_shape = x.shape
    in_features, out_features = params.in_features, params.out_features
    assert orig_shape[-1] == in_features
    out_dtype = x.dtype if jnp.issubdtype(x.dtype, jnp.floating) else jnp.float32

    tn, tk = params.tn, params.tk
    k_pad, n_pad = params.w_kn.shape

    # Per-call work touches only the (small) activation.
    x2 = x.reshape(-1, in_features).astype(activation_dtype)
    m = x2.shape[0]
    tm = min(tm, _round_up(m, 16))          # don't pad M past round_up(m, 16)
    m_pad = _round_up(m, tm)
    if m_pad != m or k_pad != in_features:
        x2 = jnp.pad(x2, ((0, m_pad - m), (0, k_pad - in_features)))

    grid = (m_pad // tm, n_pad // tn, k_pad // tk)

    # Small-M / decode regime is pure weight streaming: deepen the weight
    # pipeline so the HBM weight DMA stays saturated while MXU steps are tiny.
    weight_streaming = (grid[0] == 1) and (grid[1] * grid[2] >= 3)
    w_buffers = 3 if weight_streaming else 2
    w_spec = pl.BlockSpec(
        (tk, tn), lambda i, j, k: (k, j),
        pipeline_mode=pl.Buffered(w_buffers) if weight_streaming else None)

    x_itemsize = jnp.dtype(activation_dtype).itemsize
    w_itemsize = jnp.dtype(params.w_kn.dtype).itemsize
    o_itemsize = jnp.dtype(out_dtype).itemsize
    vmem_bytes = (2 * tm * tk * x_itemsize          # activations, double-buffered
                  + w_buffers * tk * tn * w_itemsize
                  + 2 * tn * 4                      # bias
                  + 2 * tm * tn * o_itemsize        # output
                  + tm * tn * 4)                    # f32 accumulator
    vmem_limit = int(min(max(int(vmem_bytes * 1.5), 16 * 1024 * 1024),
                         _vmem_ceiling_bytes()))

    grid_spec = pltpu.PrefetchScalarGridSpec(
        num_scalar_prefetch=0,
        grid=grid,
        in_specs=[
            pl.BlockSpec((tm, tk), lambda i, j, k: (i, k)),   # activations
            w_spec,                                           # 1 B/elem weights (K, N)
            pl.BlockSpec((1, tn), lambda i, j, k: (0, j)),    # bias
        ],
        out_specs=pl.BlockSpec((tm, tn), lambda i, j, k: (i, j)),
        scratch_shapes=[pltpu.VMEM((tm, tn), jnp.float32)],
    )

    bytes_accessed = (m_pad * k_pad * x_itemsize
                      + grid[0] * k_pad * n_pad * w_itemsize
                      + m_pad * n_pad * o_itemsize
                      + n_pad * 4)

    out2 = pl.pallas_call(
        _palettized_linear_kernel,
        out_shape=jax.ShapeDtypeStruct((m_pad, n_pad), out_dtype),
        grid_spec=grid_spec,
        compiler_params=pltpu.CompilerParams(
            dimension_semantics=("parallel", "parallel", "arbitrary"),
            vmem_limit_bytes=vmem_limit,
        ),
        cost_estimate=pl.CostEstimate(
            flops=2 * m_pad * n_pad * k_pad,
            transcendentals=0,
            bytes_accessed=bytes_accessed),
    )(x2, params.w_kn, params.bias)

    out2 = out2[:m, :out_features]
    return out2.reshape(orig_shape[:-1] + (out_features,))


if __name__ == "__main__":
    # Deterministic synthetic parameters matching the module:
    #   lookup_table : (palette_size,) float32, fp8_e4m3-representable values
    #   weight       : (out_features, in_features) uint8 palette indices
    #   bias         : (out_features,) float32
    palette_size = 256
    in_features = 256
    out_features = 128
    batch, seq = 2, 8

    key = jax.random.PRNGKey(0)
    k_lut, k_w, k_b, k_x = jax.random.split(key, 4)

    # Palette values mimic the module construction: fp8_e4m3 casts of weights.
    raw = jax.random.normal(k_lut, (palette_size,), jnp.float32) * 0.05
    lookup_table = jnp.sort(raw.astype(jnp.float8_e4m3fn).astype(jnp.float32))

    weight_idx = jax.random.randint(
        k_w, (out_features, in_features), 0, palette_size, dtype=jnp.int32
    ).astype(jnp.uint8)
    bias = jax.random.normal(k_b, (out_features,), jnp.float32) * 0.1
    x = jax.random.normal(k_x, (batch, seq, in_features), jnp.float32)

    # One-time weight-load prep: LUT expand -> K-major -> pad -> 1 B/elem fp8.
    params = prepare_palettized_weights(lookup_table, weight_idx, bias)

    out = fp8_palettized_linear(x, params)
    out = jax.block_until_ready(out)

    # Pure-JAX reference of the PyTorch forward (f32, highest precision).
    full_w = jnp.take(lookup_table, weight_idx.astype(jnp.int32), axis=0)  # (O, I)
    ref = jnp.einsum("mk,nk->mn", x.reshape(-1, in_features), full_w,
                     precision=jax.lax.Precision.HIGHEST) + bias
    ref = ref.reshape(batch, seq, out_features)

    assert out.shape == (batch, seq, out_features)
    assert out.dtype == jnp.float32
    # bf16 activations on the MXU (fp8 palette weights are exact in bf16).
    np.testing.assert_allclose(np.asarray(out), np.asarray(ref), rtol=2e-2, atol=2e-2)

    print("KERNEL_OK")
</pallas_src>

<mosaic_0001>
module attributes {stable_mosaic.version = 11 : i64} {
  func.func @_palettized_linear_kernel(%arg0: i32, %arg1: i32, %arg2: i32, %arg3: memref<16x256xbf16, #tpu.memory_space<vmem>>, %arg4: memref<256x128xf8E4M3FN, #tpu.memory_space<vmem>>, %arg5: memref<1x128xf32, #tpu.memory_space<vmem>>, %arg6: memref<16x128xf32, #tpu.memory_space<vmem>>, %arg7: memref<16x128xf32, #tpu.memory_space<vmem>>) attributes {dimension_semantics = [#tpu.dimension_semantics<parallel>, #tpu.dimension_semantics<parallel>, #tpu.dimension_semantics<arbitrary>], iteration_bounds = array<i64: 1, 1, 1>, scalar_prefetch = 0 : i64, scratch_operands = 1 : i64, tpu.core_type = #tpu.core_type<tc>, window_params = [{transform_indices = @transform_0, window_bounds = array<i64: 16, 256>}, {transform_indices = @transform_1, window_bounds = array<i64: 256, 128>}, {transform_indices = @transform_2, window_bounds = array<i64: 1, 128>}, {transform_indices = @transform_3, window_bounds = array<i64: 16, 128>}]} {
    %c0_i32 = arith.constant 0 : i32
    %0 = arith.cmpi eq, %arg2, %c0_i32 : i32
    %1 = arith.extui %0 : i1 to i32
    %c0_i32_0 = arith.constant 0 : i32
    %2 = arith.cmpi ne, %1, %c0_i32_0 : i32
    scf.if %2 {
      %cst_10 = arith.constant 0.000000e+00 : f32
      %14 = vector.broadcast %cst_10 : f32 to vector<16x128xf32>
      %c0_11 = arith.constant 0 : index
      %c0_12 = arith.constant 0 : index
      %15 = vector.load %arg7[%c0_11, %c0_12] : memref<16x128xf32, #tpu.memory_space<vmem>>, vector<16x128xf32>
      tpu.vector_store %arg7[%c0_11, %c0_12], %14 {strides = array<i32>} : memref<16x128xf32, #tpu.memory_space<vmem>>, vector<16x128xf32>,
    } else {
    }
    %c0 = arith.constant 0 : index
    %c0_1 = arith.constant 0 : index
    %3 = vector.load %arg4[%c0, %c0_1] : memref<256x128xf8E4M3FN, #tpu.memory_space<vmem>>, vector<256x128xf8E4M3FN>
    %4 = arith.extf %3 : vector<256x128xf8E4M3FN> to vector<256x128xf32>
    %5 = arith.truncf %4 : vector<256x128xf32> to vector<256x128xbf16>
    %c0_2 = arith.constant 0 : index
    %c0_3 = arith.constant 0 : index
    %6 = vector.load %arg7[%c0_2, %c0_3] : memref<16x128xf32, #tpu.memory_space<vmem>>, vector<16x128xf32>
    %c0_4 = arith.constant 0 : index
    %c0_5 = arith.constant 0 : index
    %7 = vector.load %arg3[%c0_4, %c0_5] : memref<16x256xbf16, #tpu.memory_space<vmem>>, vector<16x256xbf16>
    %cst = arith.constant dense<0.000000e+00> : vector<16x128xf32>
    %8 = tpu.matmul %7, %5, %cst {dimension_numbers = #tpu.dot_dimension_numbers<[1], [0], [0], [1], [0, 0, 1, 1], [], []>} : vector<16x256xbf16>, vector<256x128xbf16>, vector<16x128xf32> -> vector<16x128xf32>
    %9 = arith.addf %6, %8 : vector<16x128xf32>
    %c0_6 = arith.constant 0 : index
    %c0_7 = arith.constant 0 : index
    %10 = vector.load %arg7[%c0_6, %c0_7] : memref<16x128xf32, #tpu.memory_space<vmem>>, vector<16x128xf32>
    tpu.vector_store %arg7[%c0_6, %c0_7], %9 {strides = array<i32>} : memref<16x128xf32, #tpu.memory_space<vmem>>, vector<16x128xf32>,
    %c0_i32_8 = arith.constant 0 : i32
    %11 = arith.cmpi eq, %arg2, %c0_i32_8 : i32
    %12 = arith.extui %11 : i1 to i32
    %c0_i32_9 = arith.constant 0 : i32
    %13 = arith.cmpi ne, %12, %c0_i32_9 : i32
    scf.if %13 {
      %c0_10 = arith.constant 0 : index
      %c0_11 = arith.constant 0 : index
      %14 = vector.load %arg7[%c0_10, %c0_11] : memref<16x128xf32, #tpu.memory_space<vmem>>, vector<16x128xf32>
      %c0_12 = arith.constant 0 : index
      %c0_13 = arith.constant 0 : index
      %15 = vector.load %arg5[%c0_12, %c0_13] : memref<1x128xf32, #tpu.memory_space<vmem>>, vector<1x128xf32>
      %16 = vector.broadcast %15 : vector<1x128xf32> to vector<16x128xf32>
      %17 = arith.addf %14, %16 : vector<16x128xf32>
      %c0_14 = arith.constant 0 : index
      %c0_15 = arith.constant 0 : index
      %18 = vector.load %arg6[%c0_14, %c0_15] : memref<16x128xf32, #tpu.memory_space<vmem>>, vector<16x128xf32>
      tpu.vector_store %arg6[%c0_14, %c0_15], %17 {strides = array<i32>} : memref<16x128xf32, #tpu.memory_space<vmem>>, vector<16x128xf32>,
    } else {
    }
    return
  }
  func.func @transform_0(%arg0: i32, %arg1: i32, %arg2: i32) -> (i32, i32) {
    %c0_i32 = arith.constant 0 : i32
    return %arg0, %arg2 : i32, i32
  }
  func.func @transform_1(%arg0: i32, %arg1: i32, %arg2: i32) -> (i32, i32) {
    %c0_i32 = arith.constant 0 : i32
    return %arg2, %arg1 : i32, i32
  }
  func.func @transform_2(%arg0: i32, %arg1: i32, %arg2: i32) -> (i32, i32) {
    %c0_i32 = arith.constant 0 : i32
    %c0_i32_0 = arith.constant 0 : i32
    return %c0_i32, %arg1 : i32, i32
  }
  func.func @transform_3(%arg0: i32, %arg1: i32, %arg2: i32) -> (i32, i32) {
    %c0_i32 = arith.constant 0 : i32
    return %arg0, %arg1 : i32, i32
  }
}

</mosaic_0001>

<bundles_post_ra>
// kernel: tpu_custom_call.1
= control target key start
LH: loop header
LB: loop body
LE: loop exit
PB: predicated region body
PF: predicated region fallthrough
CT: control target
= control target key end

     0   :  { %8 = vsyncpa [#allocation4], 0  ;;  %s1700_s0 = inlined_call_operand.hbm [shape: bf16[16,256], index: 0, kind: input, shape index: {}]   ;;  %s1701_s1 = inlined_call_operand.hbm [shape: f8e4m3fn[256,128], index: 1, kind: input, shape index: {}]   ;;  %s1702_s2 = inlined_call_operand.vmem [shape: f32[1,128], index: 2, kind: input, shape index: {}]   ;;  %s1703_s3 = inlined_call_operand.hbm [shape: f32[16,128], index: 3, kind: output, shape index: {}]  }
   0x1   :  { %9 = vsyncpa [#allocation7], 0 }
   0x2   :  { %10 = vsyncpa [#allocation5], 0  ;;  %s1250_s12 = smov [#allocation3]  }
   0x3   :  { %s16_s13 = sshll.u32 %s1250_s12, 4  ;;  %s17_s13 = int_to_ptr.vmem [resolvable:$true] %s16_s13 }
   0x4   :  { %s1192_s14 = scalar_lea.vmem %s17_s13, 256  ;;  %p1197_p1 = scmp.lt.s32.totalorder %s17_s13, %s17_s13 }
   0x5   :  { %p1193_p0 = scmp.ne.s32.totalorder %s17_s13, %s1192_s14  ;;  %p1198_p2 = scmp.lt.s32.totalorder %s1192_s14, %s1192_s14 }
   0x7   :  { %p1199_p3 = por %p1198_p2, %p1197_p1 }
   0x9   :  { %p1200_p4 = pnand %p1199_p3, %p1193_p0 }
   0xb   :  { %1203 = shalt.err (!%p1200_p4)
}
   0xc   :  { %s1251_s15 = smov 128   ;;  %s1252_s16 = smov 8  }
   0xd   :  { %22 = dma.hbm_to_vmem [thread:$0]  %s1700_s0, 256, %s17_s13, [#allocation4], %s1251_s15, %s1251_s15, %s1252_s16  }
   0xe   :  { %s1253_s19 = smov [#allocation6]  }
   0xf   :  { %s28_s20 = sshll.u32 %s1253_s19, 4  ;;  %s29_s20 = int_to_ptr.vmem [resolvable:$true] %s28_s20 }
  0x10   :  { %s1212_s21 = scalar_lea.vmem %s29_s20, 1024  ;;  %p1217_p6 = scmp.lt.s32.totalorder %s29_s20, %s29_s20 }
  0x11   :  { %p1213_p5 = scmp.ne.s32.totalorder %s29_s20, %s1212_s21  ;;  %p1218_p7 = scmp.lt.s32.totalorder %s1212_s21, %s1212_s21 }
  0x13   :  { %p1219_p8 = por %p1218_p7, %p1217_p6 }
  0x15   :  { %p1220_p9 = pnand %p1219_p8, %p1213_p5 }
  0x17   :  { %1223 = shalt.err (!%p1220_p9)
}
  0x18   :  { %34 = dma.hbm_to_vmem [thread:$0]  %s1701_s1, 1024, %s29_s20, [#allocation7], %s1251_s15, %s1251_s15, %s1252_s16  }
  0x19   :  { %1244 = dma.done.wait [#allocation4], 256  }
  0x1a   :  { %1245 = vsyncadd [#allocation4], 4294967040 }
  0x1b   :  { %1246 = dma.done.wait [#allocation7], 1024  }
  0x1c   :  { %1247 = vsyncadd [#allocation7], 4294966272  ;;  %v50_v0 = vld [vmem:[#allocation6] sm:$0xff]  ;;  %v1287_v1 = vld [vmem:[#allocation6 + $0x8] sm:$0xff] }
  0x1d   :  { %v1289_v2 = vld [vmem:[#allocation6 + $0x10] sm:$0xff]  ;;  %v1291_v3 = vld [vmem:[#allocation6 + $0x18] sm:$0xff]  ;;  %v1293_v4 = vld [vmem:[#allocation6 + $0x20] sm:$0xff] }
  0x1e   :  { %v1295_v5 = vld [vmem:[#allocation6 + $0x28] sm:$0xff]  ;;  %v1297_v6 = vld [vmem:[#allocation6 + $0x30] sm:$0xff]  ;;  %v1299_v7 = vld [vmem:[#allocation6 + $0x38] sm:$0xff] }
  0x1f   :  { %58 = vst [vmem:[#allocation9] sm:$0xff] %v50_v0  ;;  %v1725_v12 = vmov 0 }
  0x26   :  { %v59_v8 = vld [vmem:[#allocation9] sm:$0x3] }
  0x27   :  { %v60_v9 = vunpack.c.0.f8e4m3b11 %v59_v8 }
  0x29   :  { %v64_v10 = vand.u32 2147483647, %v60_v9  ;;  %vm66_vm0 = vcmp.ne.f32.partialorder %v60_v9, %v60_v9  ;;  %v67_v11 = vmul.f32 16.0, %v60_v9 }
  0x2b   :  { %vm1301_vm1 = vcmp.gt.f32.partialorder %v64_v10, 29.0  ;;  %v1305_v13 = vsel %vm66_vm0, -0.0, %v67_v11 }
  0x2c   :  { %v1726_v12 = vsel %vm1301_vm1, 4294967295, %v1725_v12  ;;  %1728 = vst [vmem:[#allocation45_spill] sm:$0xff] %v1305_v13 }
  0x2d   :  { %1727 = vst [vmem:[#allocation44_spill] sm:$0xff] %v1726_v12 }
  0x2e   :  { %88 = vst [vmem:[#allocation10] sm:$0xff] %v50_v0  ;;  %v1729_v19 = vmov 0 }
  0x35   :  { %v90_v15 = vld [vmem:[#allocation10 + $0x2] sm:$0x3] }
  0x36   :  { %v91_v16 = vunpack.c.0.f8e4m3b11 %v90_v15 }
  0x38   :  { %v95_v17 = vand.u32 2147483647, %v91_v16  ;;  %vm97_vm2 = vcmp.ne.f32.partialorder %v91_v16, %v91_v16  ;;  %v98_v18 = vmul.f32 16.0, %v91_v16 }
  0x3a   :  { %vm1310_vm3 = vcmp.gt.f32.partialorder %v95_v17, 29.0  ;;  %v1314_v20 = vsel %vm97_vm2, -0.0, %v98_v18 }
  0x3b   :  { %v1730_v19 = vsel %vm1310_vm3, 4294967295, %v1729_v19  ;;  %1732 = vst [vmem:[#allocation47_spill] sm:$0xff] %v1314_v20 }
  0x3c   :  { %1731 = vst [vmem:[#allocation46_spill] sm:$0xff] %v1730_v19 }
  0x3d   :  { %119 = vst [vmem:[#allocation11] sm:$0xff] %v50_v0  ;;  %v1733_v26 = vmov 0 }
  0x44   :  { %v121_v22 = vld [vmem:[#allocation11 + $0x4] sm:$0x3] }
  0x45   :  { %v122_v23 = vunpack.c.0.f8e4m3b11 %v121_v22 }
  0x47   :  { %v126_v24 = vand.u32 2147483647, %v122_v23  ;;  %vm128_vm4 = vcmp.ne.f32.partialorder %v122_v23, %v122_v23  ;;  %v129_v25 = vmul.f32 16.0, %v122_v23 }
  0x49   :  { %vm1319_vm5 = vcmp.gt.f32.partialorder %v126_v24, 29.0  ;;  %v1323_v27 = vsel %vm128_vm4, -0.0, %v129_v25 }
  0x4a   :  { %v1734_v26 = vsel %vm1319_vm5, 4294967295, %v1733_v26 }
  0x4b   :  { %150 = vst [vmem:[#allocation12] sm:$0xff] %v50_v0  ;;  %v1735_v33 = vmov 0 }
  0x52   :  { %v152_v29 = vld [vmem:[#allocation12 + $0x6] sm:$0x3] }
  0x53   :  { %v153_v30 = vunpack.c.0.f8e4m3b11 %v152_v29 }
  0x55   :  { %v157_v31 = vand.u32 2147483647, %v153_v30  ;;  %vm159_vm6 = vcmp.ne.f32.partialorder %v153_v30, %v153_v30  ;;  %v160_v32 = vmul.f32 16.0, %v153_v30 }
  0x57   :  { %vm1328_vm7 = vcmp.gt.f32.partialorder %v157_v31, 29.0  ;;  %v1332_v34 = vsel %vm159_vm6, -0.0, %v160_v32 }
  0x58   :  { %v1736_v33 = vsel %vm1328_vm7, 4294967295, %v1735_v33 }
  0x59   :  { %181 = vst [vmem:[#allocation13] sm:$0xff] %v1287_v1  ;;  %v1737_v40 = vmov 0 }
  0x60   :  { %v182_v36 = vld [vmem:[#allocation13] sm:$0x3] }
  0x61   :  { %v183_v37 = vunpack.c.0.f8e4m3b11 %v182_v36 }
  0x63   :  { %v187_v38 = vand.u32 2147483647, %v183_v37  ;;  %vm189_vm8 = vcmp.ne.f32.partialorder %v183_v37, %v183_v37  ;;  %v190_v39 = vmul.f32 16.0, %v183_v37 }
  0x65   :  { %vm1338_vm9 = vcmp.gt.f32.partialorder %v187_v38, 29.0  ;;  %v1342_v41 = vsel %vm189_vm8, -0.0, %v190_v39 }
  0x66   :  { %v1738_v40 = vsel %vm1338_vm9, 4294967295, %v1737_v40 }
  0x67   :  { %211 = vst [vmem:[#allocation14] sm:$0xff] %v1287_v1  ;;  %v1739_v47 = vmov 0 }
  0x6e   :  { %v213_v43 = vld [vmem:[#allocation14 + $0x2] sm:$0x3] }
  0x6f   :  { %v214_v44 = vunpack.c.0.f8e4m3b11 %v213_v43 }
  0x71   :  { %v218_v45 = vand.u32 2147483647, %v214_v44  ;;  %vm220_vm10 = vcmp.ne.f32.partialorder %v214_v44, %v214_v44  ;;  %v221_v46 = vmul.f32 16.0, %v214_v44 }
  0x73   :  { %vm1348_vm11 = vcmp.gt.f32.partialorder %v218_v45, 29.0  ;;  %v1352_v48 = vsel %vm220_vm10, -0.0, %v221_v46 }
  0x74   :  { %v1740_v47 = vsel %vm1348_vm11, 4294967295, %v1739_v47 }
  0x75   :  { %242 = vst [vmem:[#allocation15] sm:$0xff] %v1287_v1  ;;  %v1741_v54 = vmov 0 }
  0x7c   :  { %v244_v50 = vld [vmem:[#allocation15 + $0x4] sm:$0x3] }
  0x7d   :  { %v245_v51 = vunpack.c.0.f8e4m3b11 %v244_v50 }
  0x7f   :  { %v249_v52 = vand.u32 2147483647, %v245_v51  ;;  %vm251_vm12 = vcmp.ne.f32.partialorder %v245_v51, %v245_v51  ;;  %v252_v53 = vmul.f32 16.0, %v245_v51 }
  0x81   :  { %vm1358_vm13 = vcmp.gt.f32.partialorder %v249_v52, 29.0  ;;  %v1362_v55 = vsel %vm251_vm12, -0.0, %v252_v53 }
  0x82   :  { %v1742_v54 = vsel %vm1358_vm13, 4294967295, %v1741_v54 }
  0x83   :  { %273 = vst [vmem:[#allocation16] sm:$0xff] %v1287_v1  ;;  %v1743_v61 = vmov 0 }
  0x8a   :  { %v275_v57 = vld [vmem:[#allocation16 + $0x6] sm:$0x3] }
  0x8b   :  { %v276_v58 = vunpack.c.0.f8e4m3b11 %v275_v57 }
  0x8d   :  { %v280_v59 = vand.u32 2147483647, %v276_v58  ;;  %vm282_vm14 = vcmp.ne.f32.partialorder %v276_v58, %v276_v58  ;;  %v283_v60 = vmul.f32 16.0, %v276_v58 }
  0x8f   :  { %vm1368_vm15 = vcmp.gt.f32.partialorder %v280_v59, 29.0  ;;  %v1372_v62 = vsel %vm282_vm14, -0.0, %v283_v60 }
  0x90   :  { %v1744_v61 = vsel %vm1368_vm15, 4294967295, %v1743_v61 }
  0x91   :  { %304 = vst [vmem:[#allocation17] sm:$0xff] %v1289_v2 }
  0x98   :  { %v305_v0 = vld [vmem:[#allocation17] sm:$0x3] }
  0x99   :  { %v306_v8 = vunpack.c.0.f8e4m3b11 %v305_v0 }
  0x9b   :  { %v310_v1 = vand.u32 2147483647, %v306_v8  ;;  %vm312_vm0 = vcmp.ne.f32.partialorder %v306_v8, %v306_v8  ;;  %v313_v9 = vmul.f32 16.0, %v306_v8 }
  0x9d   :  { %vm1378_vm2 = vcmp.gt.f32.partialorder %v310_v1, 29.0  ;;  %v1382_v11 = vsel %vm312_vm0, -0.0, %v313_v9 }
  0x9e   :  { %334 = vst [vmem:[#allocation18] sm:$0xff] %v1289_v2 }
  0xa5   :  { %v336_v16 = vld [vmem:[#allocation18 + $0x2] sm:$0x3] }
  0xa6   :  { %v337_v17 = vunpack.c.0.f8e4m3b11 %v336_v16 }
  0xa8   :  { %v341_v18 = vand.u32 2147483647, %v337_v17  ;;  %vm343_vm4 = vcmp.ne.f32.partialorder %v337_v17, %v337_v17  ;;  %v344_v22 = vmul.f32 16.0, %v337_v17 }
  0xaa   :  { %vm1388_vm6 = vcmp.gt.f32.partialorder %v341_v18, 29.0  ;;  %v1392_v24 = vsel %vm343_vm4, -0.0, %v344_v22 }
  0xab   :  { %365 = vst [vmem:[#allocation19] sm:$0xff] %v1289_v2 }
  0xb2   :  { %v367_v29 = vld [vmem:[#allocation19 + $0x4] sm:$0x3] }
  0xb3   :  { %v368_v30 = vunpack.c.0.f8e4m3b11 %v367_v29 }
  0xb5   :  { %v372_v31 = vand.u32 2147483647, %v368_v30  ;;  %vm374_vm8 = vcmp.ne.f32.partialorder %v368_v30, %v368_v30  ;;  %v375_v32 = vmul.f32 16.0, %v368_v30 }
  0xb7   :  { %vm1398_vm10 = vcmp.gt.f32.partialorder %v372_v31, 29.0  ;;  %v1402_v37 = vsel %vm374_vm8, -0.0, %v375_v32 }
  0xb8   :  { %396 = vst [vmem:[#allocation20] sm:$0xff] %v1289_v2 }
  0xbf   :  { %v398_v39 = vld [vmem:[#allocation20 + $0x6] sm:$0x3] }
  0xc0   :  { %v399_v43 = vunpack.c.0.f8e4m3b11 %v398_v39 }
  0xc2   :  { %v403_v44 = vand.u32 2147483647, %v399_v43  ;;  %vm405_vm12 = vcmp.ne.f32.partialorder %v399_v43, %v399_v43  ;;  %v406_v45 = vmul.f32 16.0, %v399_v43 }
  0xc4   :  { %vm1408_vm14 = vcmp.gt.f32.partialorder %v403_v44, 29.0  ;;  %v1412_v50 = vsel %vm405_vm12, -0.0, %v406_v45 }
  0xc5   :  { %427 = vst [vmem:[#allocation21] sm:$0xff] %v1291_v3 }
  0xcc   :  { %v428_v52 = vld [vmem:[#allocation21] sm:$0x3] }
  0xcd   :  { %v429_v53 = vunpack.c.0.f8e4m3b11 %v428_v52 }
  0xcf   :  { %v433_v2 = vand.u32 2147483647, %v429_v53  ;;  %vm435_vm0 = vcmp.ne.f32.partialorder %v429_v53, %v429_v53  ;;  %v436_v57 = vmul.f32 16.0, %v429_v53 }
  0xd1   :  { %vm1418_vm4 = vcmp.gt.f32.partialorder %v433_v2, 29.0  ;;  %v1422_v59 = vsel %vm435_vm0, -0.0, %v436_v57 }
  0xd2   :  { %457 = vst [vmem:[#allocation22] sm:$0xff] %v1291_v3 }
  0xd9   :  { %v459_v0 = vld [vmem:[#allocation22 + $0x2] sm:$0x3] }
  0xda   :  { %v460_v8 = vunpack.c.0.f8e4m3b11 %v459_v0 }
  0xdc   :  { %v464_v1 = vand.u32 2147483647, %v460_v8  ;;  %vm466_vm8 = vcmp.ne.f32.partialorder %v460_v8, %v460_v8  ;;  %v467_v9 = vmul.f32 16.0, %v460_v8 }
  0xde   :  { %vm1428_vm12 = vcmp.gt.f32.partialorder %v464_v1, 29.0  ;;  %v1432_v17 = vsel %vm466_vm8, -0.0, %v467_v9 }
  0xdf   :  { %488 = vst [vmem:[#allocation23] sm:$0xff] %v1291_v3 }
  0xe6   :  { %v490_v22 = vld [vmem:[#allocation23 + $0x4] sm:$0x3] }
  0xe7   :  { %v491_v29 = vunpack.c.0.f8e4m3b11 %v490_v22 }
  0xe9   :  { %v495_v30 = vand.u32 2147483647, %v491_v29  ;;  %vm497_vm0 = vcmp.ne.f32.partialorder %v491_v29, %v491_v29  ;;  %v498_v31 = vmul.f32 16.0, %v491_v29 }
  0xeb   :  { %vm1438_vm3 = vcmp.gt.f32.partialorder %v495_v30, 29.0  ;;  %v1442_v39 = vsel %vm497_vm0, -0.0, %v498_v31 }
  0xec   :  { %519 = vst [vmem:[#allocation24] sm:$0xff] %v1291_v3 }
  0xf3   :  { %v521_v44 = vld [vmem:[#allocation24 + $0x6] sm:$0x3] }
  0xf4   :  { %v522_v45 = vunpack.c.0.f8e4m3b11 %v521_v44 }
  0xf6   :  { %v526_v52 = vand.u32 2147483647, %v522_v45  ;;  %vm528_vm8 = vcmp.ne.f32.partialorder %v522_v45, %v522_v45  ;;  %v529_v53 = vmul.f32 16.0, %v522_v45 }
  0xf8   :  { %vm1448_vm1 = vcmp.gt.f32.partialorder %v526_v52, 29.0  ;;  %v1452_v57 = vsel %vm528_vm8, -0.0, %v529_v53 }
  0xf9   :  { %550 = vst [vmem:[#allocation25] sm:$0xff] %v1293_v4  ;;  %v1761_v22 = vmov 0 }
 0x100   :  { %v551_v8 = vld [vmem:[#allocation25] sm:$0x3] }
 0x101   :  { %v552_v1 = vunpack.c.0.f8e4m3b11 %v551_v8 }
 0x103   :  { %v556_v3 = vand.u32 2147483647, %v552_v1  ;;  %vm558_vm0 = vcmp.ne.f32.partialorder %v552_v1, %v552_v1  ;;  %v559_v9 = vmul.f32 16.0, %v552_v1 }
 0x105   :  { %vm1458_vm7 = vcmp.gt.f32.partialorder %v556_v3, 29.0  ;;  %v1462_v29 = vsel %vm558_vm0, -0.0, %v559_v9 }
 0x106   :  { %v1762_v22 = vsel %vm1458_vm7, 4294967295, %v1761_v22 }
 0x107   :  { %580 = vst [vmem:[#allocation26] sm:$0xff] %v1293_v4  ;;  %v1763_v53 = vmov 0 }
 0x10e   :  { %v582_v31 = vld [vmem:[#allocation26 + $0x2] sm:$0x3] }
 0x10f   :  { %v583_v44 = vunpack.c.0.f8e4m3b11 %v582_v31 }
 0x111   :  { %v587_v45 = vand.u32 2147483647, %v583_v44  ;;  %vm589_vm8 = vcmp.ne.f32.partialorder %v583_v44, %v583_v44  ;;  %v590_v52 = vmul.f32 16.0, %v583_v44 }
 0x113   :  { %vm1468_vm5 = vcmp.gt.f32.partialorder %v587_v45, 29.0  ;;  %v1472_v8 = vsel %vm589_vm8, -0.0, %v590_v52 }
 0x114   :  { %v1764_v53 = vsel %vm1468_vm5, 4294967295, %v1763_v53  ;;  %1766 = vst [vmem:[#allocation49_spill] sm:$0xff] %v1472_v8 }
 0x115   :  { %1765 = vst [vmem:[#allocation48_spill] sm:$0xff] %v1764_v53 }
 0x116   :  { %611 = vst [vmem:[#allocation27] sm:$0xff] %v1293_v4  ;;  %v1767_v14 = vmov 0 }
 0x11d   :  { %v613_v3 = vld [vmem:[#allocation27 + $0x4] sm:$0x3] }
 0x11e   :  { %v614_v9 = vunpack.c.0.f8e4m3b11 %v613_v3 }
 0x120   :  { %v618_v21 = vand.u32 2147483647, %v614_v9  ;;  %vm620_vm0 = vcmp.ne.f32.partialorder %v614_v9, %v614_v9  ;;  %v621_v31 = vmul.f32 16.0, %v614_v9 }
 0x122   :  { %vm1478_vm7 = vcmp.gt.f32.partialorder %v618_v21, 29.0  ;;  %v1482_v44 = vsel %vm620_vm0, -0.0, %v621_v31 }
 0x123   :  { %v1768_v14 = vsel %vm1478_vm7, 4294967295, %v1767_v14 }
 0x124   :  { %642 = vst [vmem:[#allocation28] sm:$0xff] %v1293_v4  ;;  %v1769_v35 = vmov 0 }
 0x12b   :  { %v644_v52 = vld [vmem:[#allocation28 + $0x6] sm:$0x3] }
 0x12c   :  { %v645_v1 = vunpack.c.0.f8e4m3b11 %v644_v52 }
 0x12e   :  { %v649_v30 = vand.u32 2147483647, %v645_v1  ;;  %vm651_vm8 = vcmp.ne.f32.partialorder %v645_v1, %v645_v1  ;;  %v652_v3 = vmul.f32 16.0, %v645_v1 }
 0x130   :  { %vm1488_vm5 = vcmp.gt.f32.partialorder %v649_v30, 29.0  ;;  %v1492_v21 = vsel %vm651_vm8, -0.0, %v652_v3 }
 0x131   :  { %v1770_v35 = vsel %vm1488_vm5, 4294967295, %v1769_v35 }
 0x132   :  { %673 = vst [vmem:[#allocation29] sm:$0xff] %v1295_v5  ;;  %v1771_v45 = vmov 0 }
 0x139   :  { %v674_v31 = vld [vmem:[#allocation29] sm:$0x3] }
 0x13a   :  { %v675_v28 = vunpack.c.0.f8e4m3b11 %v674_v31 }
 0x13c   :  { %v679_v4 = vand.u32 2147483647, %v675_v28  ;;  %vm681_vm0 = vcmp.ne.f32.partialorder %v675_v28, %v675_v28  ;;  %v682_v52 = vmul.f32 16.0, %v675_v28 }
 0x13e   :  { %vm1498_vm7 = vcmp.gt.f32.partialorder %v679_v4, 29.0  ;;  %v1502_v30 = vsel %vm681_vm0, -0.0, %v682_v52 }
 0x13f   :  { %v1772_v45 = vsel %vm1498_vm7, 4294967295, %v1771_v45 }
 0x140   :  { %703 = vst [vmem:[#allocation30] sm:$0xff] %v1295_v5  ;;  %v1773_v42 = vmov 0 }
 0x147   :  { %v705_v3 = vld [vmem:[#allocation30 + $0x2] sm:$0x3] }
 0x148   :  { %v706_v9 = vunpack.c.0.f8e4m3b11 %v705_v3 }
 0x14a   :  { %v710_v49 = vand.u32 2147483647, %v706_v9  ;;  %vm712_vm8 = vcmp.ne.f32.partialorder %v706_v9, %v706_v9  ;;  %v713_v31 = vmul.f32 16.0, %v706_v9 }
 0x14c   :  { %vm1508_vm5 = vcmp.gt.f32.partialorder %v710_v49, 29.0  ;;  %v1512_v28 = vsel %vm712_vm8, -0.0, %v713_v31 }
 0x14d   :  { %v1774_v42 = vsel %vm1508_vm5, 4294967295, %v1773_v42 }
 0x14e   :  { %734 = vst [vmem:[#allocation31] sm:$0xff] %v1295_v5 }
 0x155   :  { %v736_v52 = vld [vmem:[#allocation31 + $0x4] sm:$0x3] }
 0x156   :  { %v737_v1 = vunpack.c.0.f8e4m3b11 %v736_v52 }
 0x158   :  { %v741_v63 = vand.u32 2147483647, %v737_v1  ;;  %vm743_vm0 = vcmp.ne.f32.partialorder %v737_v1, %v737_v1  ;;  %v744_v3 = vmul.f32 16.0, %v737_v1 }
 0x15a   :  { %vm1518_vm11 = vcmp.gt.f32.partialorder %v741_v63, 29.0  ;;  %v1522_v49 = vsel %vm743_vm0, -0.0, %v744_v3 }
 0x15b   :  { %765 = vst [vmem:[#allocation32] sm:$0xff] %v1295_v5  ;;  %v1777_v15 = vmov 0 }
 0x162   :  { %v767_v31 = vld [vmem:[#allocation32 + $0x6] sm:$0x3] }
 0x163   :  { %v768_v4 = vunpack.c.0.f8e4m3b11 %v767_v31 }
 0x165   :  { %v772_v25 = vand.u32 2147483647, %v768_v4  ;;  %vm774_vm8 = vcmp.ne.f32.partialorder %v768_v4, %v768_v4  ;;  %v775_v52 = vmul.f32 16.0, %v768_v4 }
 0x167   :  { %vm1528_vm9 = vcmp.gt.f32.partialorder %v772_v25, 29.0  ;;  %v1532_v63 = vsel %vm774_vm8, -0.0, %v775_v52 }
 0x168   :  { %v1778_v15 = vsel %vm1528_vm9, 4294967295, %v1777_v15 }
 0x169   :  { %796 = vst [vmem:[#allocation33] sm:$0xff] %v1297_v6 }
 0x170   :  { %v797_v3 = vld [vmem:[#allocation33] sm:$0x3] }
 0x171   :  { %v798_v9 = vunpack.c.0.f8e4m3b11 %v797_v3 }
 0x173   :  { %v802_v5 = vand.u32 2147483647, %v798_v9  ;;  %vm804_vm0 = vcmp.ne.f32.partialorder %v798_v9, %v798_v9  ;;  %v805_v31 = vmul.f32 16.0, %v798_v9 }
 0x175   :  { %vm1538_vm5 = vcmp.gt.f32.partialorder %v802_v5, 29.0  ;;  %v1542_v25 = vsel %vm804_vm0, -0.0, %v805_v31 }
 0x176   :  { %826 = vst [vmem:[#allocation34] sm:$0xff] %v1297_v6 }
 0x17d   :  { %v828_v52 = vld [vmem:[#allocation34 + $0x2] sm:$0x3] }
 0x17e   :  { %v829_v1 = vunpack.c.0.f8e4m3b11 %v828_v52 }
 0x180   :  { %v833_v38 = vand.u32 2147483647, %v829_v1  ;;  %vm835_vm8 = vcmp.ne.f32.partialorder %v829_v1, %v829_v1  ;;  %v836_v3 = vmul.f32 16.0, %v829_v1 }
 0x182   :  { %vm1548_vm7 = vcmp.gt.f32.partialorder %v833_v38, 29.0  ;;  %v1552_v9 = vsel %vm835_vm8, -0.0, %v836_v3 }
 0x183   :  { %857 = vst [vmem:[#allocation35] sm:$0xff] %v1297_v6 }
 0x18a   :  { %v859_v31 = vld [vmem:[#allocation35 + $0x4] sm:$0x3] }
 0x18b   :  { %v860_v4 = vunpack.c.0.f8e4m3b11 %v859_v31 }
 0x18d   :  { %v864_v60 = vand.u32 2147483647, %v860_v4  ;;  %vm866_vm0 = vcmp.ne.f32.partialorder %v860_v4, %v860_v4  ;;  %v867_v52 = vmul.f32 16.0, %v860_v4 }
 0x18f   :  { %vm1558_vm15 = vcmp.gt.f32.partialorder %v864_v60, 29.0  ;;  %v868_v38 = vsel %vm866_vm0, -0.0, %v867_v52 }
 0x190   :  { %v869_v1 = vsel %vm1558_vm15, nan, %v868_v38 }
 0x191   :  { %888 = vst [vmem:[#allocation36] sm:$0xff] %v1297_v6 }
 0x198   :  { %v890_v3 = vld [vmem:[#allocation36 + $0x6] sm:$0x3] }
 0x199   :  { %v891_v43 = vunpack.c.0.f8e4m3b11 %v890_v3 }
 0x19b   :  { %v895_v5 = vand.u32 2147483647, %v891_v43  ;;  %vm897_vm8 = vcmp.ne.f32.partialorder %v891_v43, %v891_v43  ;;  %v898_v20 = vmul.f32 16.0, %v891_v43 }
 0x19d   :  { %vm1565_vm13 = vcmp.gt.f32.partialorder %v895_v5, 29.0  ;;  %v899_v4 = vsel %vm897_vm8, -0.0, %v898_v20 }
 0x19e   :  { %v900_v60 = vsel %vm1565_vm13, nan, %v899_v4 }
 0x19f   :  { %919 = vst [vmem:[#allocation37] sm:$0xff] %v1299_v7 }
 0x1a6   :  { %v920_v52 = vld [vmem:[#allocation37] sm:$0x3] }
 0x1a7   :  { %v921_v0 = vunpack.c.0.f8e4m3b11 %v920_v52 }
 0x1a9   :  { %v925_v38 = vand.u32 2147483647, %v921_v0  ;;  %vm927_vm15 = vcmp.ne.f32.partialorder %v921_v0, %v921_v0  ;;  %v928_v6 = vmul.f32 16.0, %v921_v0 }
 0x1ab   :  { %vm1572_vm0 = vcmp.gt.f32.partialorder %v925_v38, 29.0  ;;  %v929_v43 = vsel %vm927_vm15, -0.0, %v928_v6 }
 0x1ac   :  { %v930_v5 = vsel %vm1572_vm0, nan, %v929_v43 }
 0x1ad   :  { %949 = vst [vmem:[#allocation38] sm:$0xff] %v1299_v7 }
 0x1b4   :  { %v951_v20 = vld [vmem:[#allocation38 + $0x2] sm:$0x3] }
 0x1b5   :  { %v952_v31 = vunpack.c.0.f8e4m3b11 %v951_v20 }
 0x1b7   :  { %v956_v4 = vand.u32 2147483647, %v952_v31  ;;  %vm958_vm13 = vcmp.ne.f32.partialorder %v952_v31, %v952_v31  ;;  %v959_v19 = vmul.f32 16.0, %v952_v31 }
 0x1b9   :  { %vm1579_vm8 = vcmp.gt.f32.partialorder %v956_v4, 29.0  ;;  %v960_v0 = vsel %vm958_vm13, -0.0, %v959_v19 }
 0x1ba   :  { %v961_v38 = vsel %vm1579_vm8, nan, %v960_v0 }
 0x1bb   :  { %980 = vst [vmem:[#allocation39] sm:$0xff] %v1299_v7 }
 0x1c2   :  { %v982_v6 = vld [vmem:[#allocation39 + $0x4] sm:$0x3] }
 0x1c3   :  { %v983_v3 = vunpack.c.0.f8e4m3b11 %v982_v6 }
 0x1c5   :  { %v987_v43 = vand.u32 2147483647, %v983_v3  ;;  %vm989_vm15 = vcmp.ne.f32.partialorder %v983_v3, %v983_v3  ;;  %v990_v13 = vmul.f32 16.0, %v983_v3 }
 0x1c7   :  { %vm988_vm0 = vcmp.gt.f32.partialorder %v987_v43, 29.0  ;;  %v991_v20 = vsel %vm989_vm15, -0.0, %v990_v13 }
 0x1c8   :  { %v992_v12 = vsel %vm988_vm0, nan, %v991_v20 }
 0x1c9   :  { %1011 = vst [vmem:[#allocation40] sm:$0xff] %v1299_v7  ;;  %v1791_v6 = vsel %vm1438_vm3, nan, %v1442_v39  ;;  %v1792_v13 = vsel %vm1448_vm1, nan, %v1452_v57  ;;  %v1056_v43 = vpack.c.bf16 %v961_v38, %v930_v5  ;;  %v1183_v7 = vld [vmem:[#allocation3 + $0x4] ss:$8 sps:$4 sm:$0xff]   ;;  %v1055_v39 = vpack.c.bf16 %v900_v60, %v869_v1  ;;  %s1254_s24 = smov [#allocation8]  }
 0x1ca   :  { %v1049_v3 = vpack.c.bf16 %v1792_v13, %v1791_v6  ;;  %1104 = vmatprep.mubr.bf16.mxu0 %v1183_v7  ;;  %v1795_v2 = vsel %vm1398_vm10, nan, %v1402_v37  ;;  %v1796_v57 = vsel %vm1408_vm14, nan, %v1412_v50  ;;  %v1798_v16 = vsel %vm1548_vm7, nan, %v1552_v9  ;;  %s1138_s25 = sshll.u32 %s1254_s24, 4  ;;  %s1139_s25 = int_to_ptr.vmem [resolvable:$true] %s1138_s25 }
 0x1cb   :  { %v1047_v58 = vpack.c.bf16 %v1796_v57, %v1795_v2  ;;  %v1799_v36 = vsel %vm1378_vm2, nan, %v1382_v11  ;;  %v1800_v37 = vsel %vm1388_vm6, nan, %v1392_v24  ;;  %v1801_v50 = vsel %vm1518_vm11, nan, %v1522_v49  ;;  %v1181_v49 = vld [vmem:[#allocation3] ss:$8 sps:$4 sm:$0xff]   ;;  %s1224_s26 = scalar_lea.vmem %s1139_s25, 256  ;;  %p1229_p11 = scmp.lt.s32.totalorder %s1139_s25, %s1139_s25 }
 0x1cc   :  { %v1046_v46 = vpack.c.bf16 %v1800_v37, %v1799_v36  ;;  %vm1802_vm1 = vnez %v1778_v15  ;;  %vm1804_vm3 = vnez %v1742_v54  ;;  %vm1808_vm7 = vnez %v1772_v45  ;;  %p1225_p10 = scmp.ne.s32.totalorder %s1139_s25, %s1224_s26  ;;  %p1230_p12 = scmp.lt.s32.totalorder %s1224_s26, %s1224_s26 }
 0x1cd   :  { %v1803_v51 = vsel %vm1802_vm1, nan, %v1532_v63  ;;  %v1805_v10 = vsel %vm1804_vm3, nan, %v1362_v55  ;;  %v1809_v56 = vsel %vm1808_vm7, nan, %v1502_v30  ;;  %vm1812_vm11 = vnez %v1738_v40  ;;  %v1834_v30 = vld [vmem:[#allocation46_spill] sm:$0xff]  ;;  %v1153_v63 = vld [vmem:[%s1702_s2] ss:$0 sm:$0xff] }
 0x1ce   :  { %v1053_v18 = vpack.c.bf16 %v1803_v51, %v1801_v50  ;;  %v1813_v54 = vsel %vm1812_vm11, nan, %v1342_v41  ;;  %vm1814_vm2 = vnez %v1740_v47  ;;  %vm1816_vm6 = vnez %v1768_v14  ;;  %p1231_p13 = por %p1230_p12, %p1229_p11 }
 0x1cf   :  { %v1815_v55 = vsel %vm1814_vm2, nan, %v1352_v48  ;;  %vm1818_vm10 = vnez %v1770_v35  ;;  %vm1820_vm14 = vnez %v1734_v26  ;;  %v1826_v48 = vld [vmem:[#allocation48_spill] sm:$0xff]  ;;  %v1828_v35 = vld [vmem:[#allocation49_spill] sm:$0xff]  ;;  %vm1835_vm0 = vnez %v1834_v30 }
 0x1d0   :  { %v1013_v31 = vld [vmem:[#allocation40 + $0x6] sm:$0x3]  ;;  %v1821_v40 = vsel %vm1820_vm14, nan, %v1323_v27  ;;  %vm1827_vm8 = vnez %v1826_v48  ;;  %v1832_v26 = vld [vmem:[#allocation45_spill] sm:$0xff]  ;;  %p1232_p0 = pnand %p1231_p13, %p1225_p10 }
 0x1d1   :  { %v1014_v4 = vunpack.c.0.f8e4m3b11 %v1013_v31 }
 0x1d3   :  { %v1018_v8 = vand.u32 2147483647, %v1014_v4  ;;  %vm1020_vm9 = vcmp.ne.f32.partialorder %v1014_v4, %v1014_v4  ;;  %v1021_v19 = vmul.f32 16.0, %v1014_v4 }
 0x1d5   :  { %vm1019_vm13 = vcmp.gt.f32.partialorder %v1018_v8, 29.0  ;;  %v1022_v52 = vsel %vm1020_vm9, -0.0, %v1021_v19  ;;  %v1793_v8 = vsel %vm1418_vm4, nan, %v1422_v59  ;;  %v1797_v59 = vsel %vm1538_vm5, nan, %v1542_v25 }
 0x1d6   :  { %v1023_v0 = vsel %vm1019_vm13, nan, %v1022_v52  ;;  %vm1806_vm5 = vnez %v1744_v61  ;;  %vm1810_vm9 = vnez %v1774_v42  ;;  %v1044_v61 = vpack.c.bf16 %v1815_v55, %v1813_v54 }
 0x1d7   :  { %v1057_v53 = vpack.c.bf16 %v1023_v0, %v992_v12  ;;  %v1794_v12 = vsel %vm1428_vm12, nan, %v1432_v17  ;;  %v1054_v17 = vpack.c.bf16 %v1798_v16, %v1797_v59  ;;  %v1807_v11 = vsel %vm1806_vm5, nan, %v1372_v62 }
 0x1d8   :  { %v1048_v32 = vpack.c.bf16 %v1794_v12, %v1793_v8  ;;  %v1045_v23 = vpack.c.bf16 %v1807_v11, %v1805_v10  ;;  %v1811_v15 = vsel %vm1810_vm9, nan, %v1512_v28  ;;  %v1817_v62 = vsel %vm1816_vm6, nan, %v1482_v44 }
 0x1d9   :  { %1154 = vmatprep.subr.bf16.mxu0 %v1057_v53  ;;  %v1052_v24 = vpack.c.bf16 %v1811_v15, %v1809_v56  ;;  %v1819_v42 = vsel %vm1818_vm10, nan, %v1492_v21  ;;  %vm1822_vm4 = vnez %v1736_v33  ;;  %vm1824_vm12 = vnez %v1762_v22  ;;  %v1830_v21 = vld [vmem:[#allocation44_spill] sm:$0xff]  ;;  %v1836_v33 = vld [vmem:[#allocation47_spill] sm:$0xff] }
 0x1da   :  { %1155 = vmatpush3.bf16.msra.mxu0 %v1049_v3  ;;  %v1051_v53 = vpack.c.bf16 %v1819_v42, %v1817_v62  ;;  %v1823_v41 = vsel %vm1822_vm4, nan, %v1332_v34  ;;  %v1825_v14 = vsel %vm1824_vm12, nan, %v1462_v29  ;;  %v1829_v44 = vsel %vm1827_vm8, nan, %v1828_v35 }
 0x1db   :  { %1156 = vmatprep.subr.bf16.mxu0 %v1056_v43  ;;  %v1043_v47 = vpack.c.bf16 %v1823_v41, %v1821_v40  ;;  %v1050_v45 = vpack.c.bf16 %v1829_v44, %v1825_v14  ;;  %vm1831_vm15 = vnez %v1830_v21  ;;  %v1837_v34 = vsel %vm1835_vm0, nan, %v1836_v33 }
 0x1dc   :  { %v1833_v27 = vsel %vm1831_vm15, nan, %v1832_v26 }
 0x1dd   :  { %v1042_v28 = vpack.c.bf16 %v1837_v34, %v1833_v27 }
 0x1de   :  { %1157 = vmatpush3.bf16.msra.mxu0 %v1048_v32 }
 0x1df   :  { %1158 = vmatprep.subr.bf16.mxu0 %v1055_v39 }
 0x1e2   :  { %1159 = vmatpush3.bf16.msra.mxu0 %v1047_v58 }
 0x1e3   :  { %1160 = vmatprep.subr.bf16.mxu0 %v1054_v17 }
 0x1e6   :  { %1161 = vmatpush3.bf16.msra.mxu0 %v1046_v46 }
 0x1e7   :  { %1162 = vmatprep.subr.bf16.mxu0 %v1053_v18 }
 0x1ea   :  { %1163 = vmatpush3.bf16.msra.mxu0 %v1045_v23 }
 0x1eb   :  { %1164 = vmatprep.subr.bf16.mxu0 %v1052_v24 }
 0x1ee   :  { %1165 = vmatpush3.bf16.msra.mxu0 %v1044_v61 }
 0x1ef   :  { %1166 = vmatprep.subr.bf16.mxu0 %v1051_v53 }
 0x1f2   :  { %1167 = vmatpush3.bf16.msra.mxu0 %v1043_v47 }
 0x1f3   :  { %1168 = vmatprep.subr.bf16.mxu0 %v1050_v45 }
 0x1f6   :  { %1169 = vmatpush3.bf16.msra.mxu0 %v1042_v28 }
 0x1f9   :  { %1105 = vmatmul.mubr.bf16.vlgmr.msra.gmra.mxu0 %v1181_v49 }
 0x2b9   :  { %v1170_v22 = vpop.f32.mrf.mxu0 }
 0x2bb   :  { %v1171_v29 = vpop.f32.mrf.mxu0 }
 0x2bc   :  { %v1172_v25 = vadd.f32 %v1171_v29, %v1170_v22 }
 0x2bd   :  { %v1173_v9 = vpop.f32.mrf.mxu0 }
 0x2be   :  { %v1129_v1 = vadd.f32 %v1172_v25, %v1153_v63 }
 0x2bf   :  { %v1174_v60 = vpop.f32.mrf.mxu0 }
 0x2c0   :  { %v1175_v5 = vadd.f32 %v1174_v60, %v1173_v9  ;;  %1131 = vst [vmem:[#allocation8] sm:$0xff] %v1129_v1 }
 0x2c2   :  { %v1130_v38 = vadd.f32 %v1175_v5, %v1153_v63 }
 0x2c4   :  { %1132 = vst [vmem:[#allocation8 + $0x8] sm:$0xff] %v1130_v38 }
 0x2c5   :  { %1235 = shalt.err (!%p1232_p0)
}
 0x2c6   :  { %1144 = dma.vmem_to_hbm [thread:$0]  %s1139_s25, 256, %s1703_s3, [#allocation5], %s1251_s15, %s1251_s15, %s1252_s16  }
 0x2c7   :  { %1248 = dma.done.wait [#allocation5], 256  }
 0x2c8   :  { %1249 = vsyncadd [#allocation5], 4294967040 }
 0x2c9   :  { %1148 = vsyncpa [#allocation4], 1 }
 0x2ca   :  { %1149 = vsyncpa [#allocation7], 1 }
 0x2cb   :  { %1150 = vsyncpa [#allocation5], 1 }

</bundles_post_ra>
